<compile_context>
chip_gen: v7x
topology: tpu7x:2x2x1
jax: 0.10.0
libtpu: 0.0.40
codegen_flags: <defaults>
</compile_context>

<pallas_src>
import jax
import jax.numpy as jnp
from jax import lax
from jax.experimental import pallas as pl
from jax.experimental.pallas import tpu as pltpu


def _vmem_capacity_bytes():
    """Physical VMEM per TensorCore; conservative fallback if the query fails."""
    try:
        cap = int(getattr(pltpu.get_tpu_info(), "vmem_capacity_bytes", 0))
        if cap > 0:
            return cap
    except Exception:
        pass
    return 64 * 1024 * 1024  # v7x per-TC VMEM (smallest across v5e/v6e/v7x)


def _largest_divisor_at_most(n, cap):
    cap = max(1, min(n, cap))
    for d in range(cap, 0, -1):
        if n % d == 0:
            return d
    return 1


# ----------------------------- fused single-pass kernel -----------------------------

def _fused_kernel(x_ref, w1t_ref, b1_ref, w2t_ref, b2_ref, wsp_ref, bsp_ref, o_ref):
    """x_ref/o_ref: [nB, C, S].  Weights pre-transposed in the wrapper."""
    x = x_ref[...].astype(jnp.float32)
    # Squeeze: global spatial max per (n, c) row (lane reduce).
    m = jnp.max(x, axis=2)                                               # [nB, C]
    # Excitation MLP (tiny [nB,C]@[C,Ch] / [nB,Ch]@[Ch,C]; MXU has huge slack here).
    h = jnp.dot(m, w1t_ref[...], preferred_element_type=jnp.float32) + b1_ref[...]
    h = jnp.where(h > 0.0, h, 0.2 * h)                                   # LeakyReLU(0.2)
    g = jax.nn.sigmoid(
        jnp.dot(h, w2t_ref[...], preferred_element_type=jnp.float32) + b2_ref[...])
    g = g[:, :, None]                                                    # [nB, C, 1]
    # Spatial gate: channel contraction as VPU multiply + sublane reduce (lane-dense).
    s = jax.nn.sigmoid(
        jnp.sum(wsp_ref[...] * x, axis=1, keepdims=True) + bsp_ref[0])   # [nB, 1, S]
    # Fused combine: g*x + s*x == (g + s) * x  (one fewer full-slab multiply).
    o_ref[...] = ((g + s) * x).astype(o_ref.dtype)


# ----------------------------- two-pass fallback kernels -----------------------------

def _make_max_kernel(s_total):
    def kernel(x_ref, m_ref, acc_ref):
        """Pass 1: running spatial max.  x_ref: [nB, C, tS]; m_ref/acc_ref: [nB, C, 1]."""
        nB, C, tS = x_ref.shape
        si = pl.program_id(1)
        # Mask the ragged last tile in-kernel (no XLA-side padding of x).
        valid = s_total - si * tS
        lane = lax.broadcasted_iota(jnp.int32, (nB, C, tS), 2)
        x = jnp.where(lane < valid, x_ref[...].astype(jnp.float32), -jnp.inf)
        tile_max = jnp.max(x, axis=2, keepdims=True)

        @pl.when(si == 0)
        def _():
            acc_ref[...] = tile_max

        @pl.when(si != 0)
        def _():
            acc_ref[...] = jnp.maximum(acc_ref[...], tile_max)

        @pl.when(si == pl.num_programs(1) - 1)
        def _():
            m_ref[...] = acc_ref[...]

    return kernel


def _apply_kernel(x_ref, g_ref, wsp_ref, bsp_ref, o_ref):
    """Pass 2: out = (g + s) * x,  s = sigmoid(wsp . x + bsp).  x/o: [nB, C, tS]."""
    x = x_ref[...].astype(jnp.float32)
    s = jax.nn.sigmoid(
        jnp.sum(wsp_ref[...] * x, axis=1, keepdims=True) + bsp_ref[0])   # [nB, 1, tS]
    # Ragged last tile: out-of-range lanes are dropped by the pipeline writeback.
    o_ref[...] = ((g_ref[...] + s) * x).astype(o_ref.dtype)


# ------------------------------------ wrapper ------------------------------------

def sqex_block(x, params, *, force_two_pass=False, max_block_bytes=None):
    """x: [N, C, D, H, W] float32.  params: dict of 1x1x1 conv weights/biases."""
    N, C, D, H, W = x.shape
    Ch = C // 2
    S = D * H * W
    itemsize = x.dtype.itemsize

    vmem_cap = _vmem_capacity_bytes()
    vmem_limit = min((vmem_cap * 3) // 4, 96 * 1024 * 1024)   # scoped-VMEM headroom
    # Per-block byte budget so double-buffered in+out plus f32 temporaries fit vmem_limit.
    block_budget = max(256 * 1024, vmem_limit // 8)
    if max_block_bytes is not None:
        block_budget = int(max_block_bytes)

    x2 = x.reshape(N, C, S)                                    # free (contiguous) view

    w1t = params["w1"].reshape(Ch, C).T.astype(jnp.float32)    # [C, Ch]
    b1 = params["b1"].reshape(1, Ch).astype(jnp.float32)
    w2t = params["w2"].reshape(C, Ch).T.astype(jnp.float32)    # [Ch, C]
    b2 = params["b2"].reshape(1, C).astype(jnp.float32)
    wsp = params["wsp"].reshape(1, C, 1).astype(jnp.float32)
    bsp = params["bsp"].reshape(1).astype(jnp.float32)

    sample_bytes = C * S * itemsize

    if (not force_two_pass) and sample_bytes <= block_budget:
        # ------------------------- fused single pass -------------------------
        # Keep >= 2 grid steps when N > 1 (pipelining + megacore sharding on v7x).
        if N > 1:
            nb_cap = min(max(1, N // 2), max(1, block_budget // sample_bytes))
        else:
            nb_cap = 1
        nB = _largest_divisor_at_most(N, nb_cap)
        out = pl.pallas_call(
            _fused_kernel,
            out_shape=jax.ShapeDtypeStruct((N, C, S), x.dtype),
            grid_spec=pltpu.PrefetchScalarGridSpec(
                num_scalar_prefetch=0,
                grid=(N // nB,),
                in_specs=[
                    pl.BlockSpec((nB, C, S), lambda i: (i, 0, 0)),
                    pl.BlockSpec((C, Ch), lambda i: (0, 0)),
                    pl.BlockSpec((1, Ch), lambda i: (0, 0)),
                    pl.BlockSpec((Ch, C), lambda i: (0, 0)),
                    pl.BlockSpec((1, C), lambda i: (0, 0)),
                    pl.BlockSpec((1, C, 1), lambda i: (0, 0, 0)),
                    pl.BlockSpec(memory_space=pltpu.MemorySpace.SMEM),   # bsp scalar
                ],
                out_specs=pl.BlockSpec((nB, C, S), lambda i: (i, 0, 0)),
            ),
            compiler_params=pltpu.CompilerParams(
                dimension_semantics=("parallel",),
                vmem_limit_bytes=vmem_limit),
        )(x2, w1t, b1, w2t, b2, wsp, bsp)
        return out.reshape(N, C, D, H, W)

    # --------------- two-pass fallback (slab exceeds VMEM budget) ---------------
    # Block over the batch axis too (C is tiny -> widen sublanes), big spatial tiles.
    nB = _largest_divisor_at_most(N, 8)
    tS = max(128, (block_budget // (nB * C * itemsize)) // 128 * 128)
    tS = min(tS, (S + 127) // 128 * 128)
    n_s = pl.cdiv(S, tS)

    # Pass 1: per-(n, c) global spatial max with a running max in VMEM scratch.
    m = pl.pallas_call(
        _make_max_kernel(S),
        out_shape=jax.ShapeDtypeStruct((N, C, 1), jnp.float32),
        grid_spec=pltpu.PrefetchScalarGridSpec(
            num_scalar_prefetch=0,
            grid=(N // nB, n_s),
            in_specs=[pl.BlockSpec((nB, C, tS), lambda n, si: (n, 0, si))],
            out_specs=pl.BlockSpec((nB, C, 1), lambda n, si: (n, 0, 0)),
            scratch_shapes=[pltpu.VMEM((nB, C, 1), jnp.float32)],
        ),
        compiler_params=pltpu.CompilerParams(
            dimension_semantics=("parallel", "arbitrary"),
            vmem_limit_bytes=vmem_limit),
    )(x2)

    # Excitation MLP (tiny, [N, C]) in plain XLA between the passes.
    mv = m.reshape(N, C)
    h = mv @ w1t + b1
    h = jnp.where(h > 0.0, h, 0.2 * h)                          # LeakyReLU(0.2)
    g = jax.nn.sigmoid(h @ w2t + b2).reshape(N, C, 1)           # channel gate

    # Pass 2: apply channel + spatial gates (lane-dense output blocks).
    out = pl.pallas_call(
        _apply_kernel,
        out_shape=jax.ShapeDtypeStruct((N, C, S), x.dtype),
        grid_spec=pltpu.PrefetchScalarGridSpec(
            num_scalar_prefetch=0,
            grid=(N // nB, n_s),
            in_specs=[
                pl.BlockSpec((nB, C, tS), lambda n, si: (n, 0, si)),
                pl.BlockSpec((nB, C, 1), lambda n, si: (n, 0, 0)),
                pl.BlockSpec((1, C, 1), lambda n, si: (0, 0, 0)),
                pl.BlockSpec(memory_space=pltpu.MemorySpace.SMEM),       # bsp scalar
            ],
            out_specs=pl.BlockSpec((nB, C, tS), lambda n, si: (n, 0, si)),
        ),
        compiler_params=pltpu.CompilerParams(
            dimension_semantics=("parallel", "parallel"),
            vmem_limit_bytes=vmem_limit),
    )(x2, g, wsp, bsp)

    return out.reshape(N, C, D, H, W)


def sqex_reference(x, params):
    """Pure-JAX reference mirroring the PyTorch forward (NCDHW)."""
    N, C, D, H, W = x.shape
    Ch = C // 2
    m = jnp.max(x, axis=(2, 3, 4))                                       # [N, C]
    h = m @ params["w1"].reshape(Ch, C).T + params["b1"].reshape(Ch)
    h = jnp.where(h > 0, h, 0.2 * h)
    g = jax.nn.sigmoid(h @ params["w2"].reshape(C, Ch).T + params["b2"].reshape(C))
    g = g.reshape(N, C, 1, 1, 1)
    s = jnp.einsum("ncdhw,c->ndhw", x, params["wsp"].reshape(C)) + params["bsp"].reshape(())
    s = jax.nn.sigmoid(s)[:, None]                                       # [N, 1, D, H, W]
    return g * x + s * x


if __name__ == "__main__":
    key = jax.random.PRNGKey(0)
    # in_chs = 8 -> hidden = 4; spatial S = 4*8*13 = 416 (ragged vs 128 lanes).
    N, C, D, H, W = 2, 8, 4, 8, 13
    Ch = C // 2

    ks = jax.random.split(key, 7)
    x = jax.random.normal(ks[0], (N, C, D, H, W), dtype=jnp.float32)
    params = {
        # 1x1x1 conv weights initialized deterministically (synthetic, no checkpoint)
        "w1": 0.3 * jax.random.normal(ks[1], (Ch, C), dtype=jnp.float32),
        "b1": 0.1 * jax.random.normal(ks[2], (Ch,), dtype=jnp.float32),
        "w2": 0.3 * jax.random.normal(ks[3], (C, Ch), dtype=jnp.float32),
        "b2": 0.1 * jax.random.normal(ks[4], (C,), dtype=jnp.float32),
        "wsp": 0.3 * jax.random.normal(ks[5], (1, C), dtype=jnp.float32),
        "bsp": 0.1 * jax.random.normal(ks[6], (1,), dtype=jnp.float32),
    }

    ref = sqex_reference(x, params)

    # Primary (fused single-pass) path.
    out = jax.block_until_ready(sqex_block(x, params))
    assert out.shape == ref.shape
    assert jnp.allclose(out, ref, atol=2e-4, rtol=2e-4), "fused path mismatch vs reference"

    # Two-pass fallback, forced with tiny blocks so the in-kernel ragged-tail mask,
    # the running-max scratch, and the (nB, C, tS) batch-blocked tiling are exercised.
    out2 = jax.block_until_ready(
        sqex_block(x, params, force_two_pass=True, max_block_bytes=4096))
    assert jnp.allclose(out2, ref, atol=2e-4, rtol=2e-4), "two-pass path mismatch vs reference"

    print("KERNEL_OK")
</pallas_src>

<mosaic_0001>
module attributes {stable_mosaic.version = 11 : i64} {
  func.func @_fused_kernel(%arg0: i32, %arg1: memref<1x8x416xf32, #tpu.memory_space<vmem>>, %arg2: memref<8x4xf32, #tpu.memory_space<vmem>>, %arg3: memref<1x4xf32, #tpu.memory_space<vmem>>, %arg4: memref<4x8xf32, #tpu.memory_space<vmem>>, %arg5: memref<1x8xf32, #tpu.memory_space<vmem>>, %arg6: memref<1x8x1xf32, #tpu.memory_space<vmem>>, %arg7: memref<1xf32, #tpu.memory_space<smem>>, %arg8: memref<1x8x416xf32, #tpu.memory_space<vmem>>) attributes {dimension_semantics = [#tpu.dimension_semantics<parallel>], iteration_bounds = array<i64: 2>, scalar_prefetch = 0 : i64, scratch_operands = 0 : i64, tpu.core_type = #tpu.core_type<tc>, window_params = [{transform_indices = @transform_0, window_bounds = array<i64: 1, 8, 416>}, {pipeline_mode = #tpu.pipeline_mode<synchronous>, transform_indices = @transform_1, window_bounds = array<i64: 8, 4>}, {pipeline_mode = #tpu.pipeline_mode<synchronous>, transform_indices = @transform_2, window_bounds = array<i64: 1, 4>}, {pipeline_mode = #tpu.pipeline_mode<synchronous>, transform_indices = @transform_3, window_bounds = array<i64: 4, 8>}, {pipeline_mode = #tpu.pipeline_mode<synchronous>, transform_indices = @transform_4, window_bounds = array<i64: 1, 8>}, {pipeline_mode = #tpu.pipeline_mode<synchronous>, transform_indices = @transform_5, window_bounds = array<i64: 1, 8, 1>}, {transform_indices = @transform_6, window_bounds = array<i64: 1>}, {transform_indices = @transform_7, window_bounds = array<i64: 1, 8, 416>}]} {
    %c0 = arith.constant 0 : index
    %c0_0 = arith.constant 0 : index
    %c0_1 = arith.constant 0 : index
    %0 = vector.load %arg1[%c0, %c0_0, %c0_1] : memref<1x8x416xf32, #tpu.memory_space<vmem>>, vector<1x8x416xf32>
    %cst = arith.constant dense<0xFF800000> : vector<1x8xf32>
    %1 = vector.multi_reduction <maximumf>, %0, %cst [2] : vector<1x8x416xf32> to vector<1x8xf32>
    %c0_2 = arith.constant 0 : index
    %c0_3 = arith.constant 0 : index
    %2 = vector.load %arg2[%c0_2, %c0_3] : memref<8x4xf32, #tpu.memory_space<vmem>>, vector<8x4xf32>
    %cst_4 = arith.constant dense<0.000000e+00> : vector<1x4xf32>
    %3 = tpu.matmul %1, %2, %cst_4 {dimension_numbers = #tpu.dot_dimension_numbers<[1], [0], [0], [1], [0, 0, 1, 1], [], []>} : vector<1x8xf32>, vector<8x4xf32>, vector<1x4xf32> -> vector<1x4xf32>
    %c0_5 = arith.constant 0 : index
    %c0_6 = arith.constant 0 : index
    %4 = vector.load %arg3[%c0_5, %c0_6] : memref<1x4xf32, #tpu.memory_space<vmem>>, vector<1x4xf32>
    %5 = arith.addf %3, %4 : vector<1x4xf32>
    %cst_7 = arith.constant 0.000000e+00 : f32
    %6 = vector.broadcast %cst_7 : f32 to vector<1x4xf32>
    %7 = arith.cmpf ogt, %5, %6 : vector<1x4xf32>
    %cst_8 = arith.constant 2.000000e-01 : f32
    %8 = vector.broadcast %cst_8 : f32 to vector<1x4xf32>
    %9 = arith.mulf %8, %5 : vector<1x4xf32>
    %10 = arith.select %7, %5, %9 : vector<1x4xi1>, vector<1x4xf32>
    %c0_9 = arith.constant 0 : index
    %c0_10 = arith.constant 0 : index
    %11 = vector.load %arg4[%c0_9, %c0_10] : memref<4x8xf32, #tpu.memory_space<vmem>>, vector<4x8xf32>
    %cst_11 = arith.constant dense<0.000000e+00> : vector<1x8xf32>
    %12 = tpu.matmul %10, %11, %cst_11 {dimension_numbers = #tpu.dot_dimension_numbers<[1], [0], [0], [1], [0, 0, 1, 1], [], []>} : vector<1x4xf32>, vector<4x8xf32>, vector<1x8xf32> -> vector<1x8xf32>
    %c0_12 = arith.constant 0 : index
    %c0_13 = arith.constant 0 : index
    %13 = vector.load %arg5[%c0_12, %c0_13] : memref<1x8xf32, #tpu.memory_space<vmem>>, vector<1x8xf32>
    %14 = arith.addf %12, %13 : vector<1x8xf32>
    %15 = arith.negf %14 : vector<1x8xf32>
    %16 = math.exp %15 : vector<1x8xf32>
    %cst_14 = arith.constant 1.000000e+00 : f32
    %17 = vector.broadcast %cst_14 : f32 to vector<1x8xf32>
    %18 = arith.addf %17, %16 : vector<1x8xf32>
    %19 = arith.divf %17, %18 : vector<1x8xf32>
    %20 = vector.shape_cast %19 : vector<1x8xf32> to vector<1x8x1xf32>
    %c0_15 = arith.constant 0 : index
    %c0_16 = arith.constant 0 : index
    %c0_17 = arith.constant 0 : index
    %21 = vector.load %arg6[%c0_15, %c0_16, %c0_17] : memref<1x8x1xf32, #tpu.memory_space<vmem>>, vector<1x8x1xf32>
    %22 = vector.broadcast %21 : vector<1x8x1xf32> to vector<1x8x416xf32>
    %23 = arith.mulf %22, %0 : vector<1x8x416xf32>
    %cst_18 = arith.constant dense<0.000000e+00> : vector<1x416xf32>
    %24 = vector.multi_reduction <add>, %23, %cst_18 [1] : vector<1x8x416xf32> to vector<1x416xf32>
    %25 = vector.shape_cast %24 : vector<1x416xf32> to vector<1x1x416xf32>
    %c0_19 = arith.constant 0 : index
    %26 = memref.load %arg7[%c0_19] : memref<1xf32, #tpu.memory_space<smem>>
    %27 = vector.broadcast %26 : f32 to vector<1x1x416xf32>
    %28 = arith.addf %25, %27 : vector<1x1x416xf32>
    %29 = arith.negf %28 : vector<1x1x416xf32>
    %30 = math.exp %29 : vector<1x1x416xf32>
    %cst_20 = arith.constant 1.000000e+00 : f32
    %31 = vector.broadcast %cst_20 : f32 to vector<1x1x416xf32>
    %32 = arith.addf %31, %30 : vector<1x1x416xf32>
    %33 = arith.divf %31, %32 : vector<1x1x416xf32>
    %34 = vector.broadcast %20 : vector<1x8x1xf32> to vector<1x8x416xf32>
    %35 = vector.broadcast %33 : vector<1x1x416xf32> to vector<1x8x416xf32>
    %36 = arith.addf %34, %35 : vector<1x8x416xf32>
    %37 = arith.mulf %36, %0 : vector<1x8x416xf32>
    %c0_21 = arith.constant 0 : index
    %c0_22 = arith.constant 0 : index
    %c0_23 = arith.constant 0 : index
    %38 = vector.load %arg8[%c0_21, %c0_22, %c0_23] : memref<1x8x416xf32, #tpu.memory_space<vmem>>, vector<1x8x416xf32>
    tpu.vector_store %arg8[%c0_21, %c0_22, %c0_23], %37 {strides = array<i32>} : memref<1x8x416xf32, #tpu.memory_space<vmem>>, vector<1x8x416xf32>,
    return
  }
  func.func @transform_0(%arg0: i32) -> (i32, i32, i32) {
    %c0_i32 = arith.constant 0 : i32
    %c0_i32_0 = arith.constant 0 : i32
    %c0_i32_1 = arith.constant 0 : i32
    return %arg0, %c0_i32, %c0_i32_0 : i32, i32, i32
  }
  func.func @transform_1(%arg0: i32) -> (i32, i32) {
    %c0_i32 = arith.constant 0 : i32
    %c0_i32_0 = arith.constant 0 : i32
    %c0_i32_1 = arith.constant 0 : i32
    return %c0_i32, %c0_i32_0 : i32, i32
  }
  func.func @transform_2(%arg0: i32) -> (i32, i32) {
    %c0_i32 = arith.constant 0 : i32
    %c0_i32_0 = arith.constant 0 : i32
    %c0_i32_1 = arith.constant 0 : i32
    return %c0_i32, %c0_i32_0 : i32, i32
  }
  func.func @transform_3(%arg0: i32) -> (i32, i32) {
    %c0_i32 = arith.constant 0 : i32
    %c0_i32_0 = arith.constant 0 : i32
    %c0_i32_1 = arith.constant 0 : i32
    return %c0_i32, %c0_i32_0 : i32, i32
  }
  func.func @transform_4(%arg0: i32) -> (i32, i32) {
    %c0_i32 = arith.constant 0 : i32
    %c0_i32_0 = arith.constant 0 : i32
    %c0_i32_1 = arith.constant 0 : i32
    return %c0_i32, %c0_i32_0 : i32, i32
  }
  func.func @transform_5(%arg0: i32) -> (i32, i32, i32) {
    %c0_i32 = arith.constant 0 : i32
    %c0_i32_0 = arith.constant 0 : i32
    %c0_i32_1 = arith.constant 0 : i32
    %c0_i32_2 = arith.constant 0 : i32
    return %c0_i32, %c0_i32_0, %c0_i32_1 : i32, i32, i32
  }
  func.func @transform_6(%arg0: i32) -> i32 {
    %c0_i32 = arith.constant 0 : i32
    %c0_i32_0 = arith.constant 0 : i32
    return %c0_i32 : i32
  }
  func.func @transform_7(%arg0: i32) -> (i32, i32, i32) {
    %c0_i32 = arith.constant 0 : i32
    %c0_i32_0 = arith.constant 0 : i32
    %c0_i32_1 = arith.constant 0 : i32
    return %arg0, %c0_i32, %c0_i32_0 : i32, i32, i32
  }
}

</mosaic_0001>

<bundles_post_ra>
// kernel: tpu_custom_call.1
= control target key start
LH: loop header
LB: loop body
LE: loop exit
PB: predicated region body
PF: predicated region fallthrough
CT: control target
= control target key end

     0   :  { %s1104_s0 = inlined_call_operand.hbm [shape: f32[2,8,416], index: 0, kind: input, shape index: {}]   ;;  %s1105_s1 = inlined_call_operand.vmem [shape: f32[8,4], index: 1, kind: input, shape index: {}]   ;;  %s1106_s2 = inlined_call_operand.vmem [shape: f32[1,4], index: 2, kind: input, shape index: {}]   ;;  %s1107_s3 = inlined_call_operand.vmem [shape: f32[4,8], index: 3, kind: input, shape index: {}]   ;;  %s1108_s4 = inlined_call_operand.vmem [shape: f32[1,8], index: 4, kind: input, shape index: {}]   ;;  %s1109_s5 = inlined_call_operand.vmem [shape: f32[1,8,1], index: 5, kind: input, shape index: {}]   ;;  %s1110_s6 = inlined_call_operand.<no memory space> [shape: f32[1], index: 6, kind: input, shape index: {}]   ;;  %s1111_s7 = inlined_call_operand.hbm [shape: f32[2,8,416], index: 7, kind: output, shape index: {}]  }
   0x1   :  { %12 = sst [smem:[#allocation2]] %s1110_s6 }
   0x2   :  { %13 = vsyncpa [#allocation4], 0 }
   0x3   :  { %15 = vsyncpa [#allocation4 + $0x1], 0 }
   0x4   :  { %16 = vsyncpa [#allocation5], 0 }
   0x5   :  { %18 = vsyncpa [#allocation5 + $0x1], 0  ;;  %s901_s26 = smov 0   ;;  %s903_s27 = smov 0  }
   0x6   :  { %s905_s28 = smov 0   ;;  %s907_s29 = smov 0  }
   0x7 LB: > { %s922_s6 = sadd.s32 4294967295, %s851_s29   ;;  %s647_s30 = sadd.s32 4294967294, %s851_s29   ;;  %s851_s29 = sphi %s907_s29, %s1126_s29   ;;  %s847_s28 = sphi %s905_s28, %s1125_s28   ;;  %s843_s27 = sphi %s903_s27, %s1124_s27   ;;  %s839_s26 = sphi %s901_s26, %s1123_s26  }
   0x8   : > { %s926_s8 = sadd.s32 1, %s851_s29   ;;  %s31_s9 = sadd.s32 1, %s847_s28 }
   0x9   : > { %s28_s10 = ssub.s32 %s851_s29, %s926_s8  ;;  %p38_p0 = scmp.ne.s32.totalorder %s847_s28, %s843_s27 }
   0xa   : > { %p29_p1 = scmp.eq.s32.totalorder %s28_s10, 0  ;;  %p39_p2 = scmp.eq.s32.totalorder %s851_s29, 0 }
   0xb   : > { %p44_p3 = scmp.ne.s32.totalorder %s843_s27, %s839_s26  ;;  %p45_p4 = scmp.eq.s32.totalorder %s922_s6, 0 }
   0xc   : > { %s938_s11 = scalar_select %p29_p1, %s847_s28, %s31_s9  }
   0xd   : > { %p940_p5 = por %p39_p2, %p38_p0  ;;  %p944_p6 = por %p45_p4, %p44_p3 }
   0xe   : > { %p194_p7 = scmp.eq.s32.totalorder %s922_s6, 1  ;;  %p200_p8 = scmp.eq.s32.totalorder %s647_s30, 1 }
   0xf   : > { %p697_p10 = scmp.lt.s32.totalorder %s851_s29, 2  ;;  %s238_s16 = sand.u32 1, %s847_s28  }
  0x10   : > { %p951_p11 = por %p194_p7, %p38_p0  ;;  %p955_p12 = por %p200_p8, %p44_p3 }
  0x11   : > { %s669_s17 = sshll.u32 %s851_s29, 9  ;;  %s650_s18 = sshll.u32 %s238_s16, 5 }
  0x12   : > { %s1115_s14 = scalar_select %p951_p11, 1, 0 }
  0x13   : > { %s1116_s15 = scalar_select %p955_p12, 1, 0 }
  0x14   : > { %s964_s21 = scalar_lea.hbm %s1104_s0, %s669_s17  ;;  %s242_s22 = scalar_lea.vmem [#allocation3], %s650_s18 }
  0x15   : > { %s250_s23 = sshll.u32 %s242_s22, 4  ;;  %p968_p13 = pnand %p697_p10, %p940_p5  ;;  %s972_s23 = int_to_ptr.vmem [resolvable:$true] %s250_s23 }
  0x16   : > { %s239_s25 = scalar_lea.sflag [#allocation4], %s238_s16  ;;  %s755_s30 = scalar_lea.hbm %s964_s21, 512 }
  0x17   : > { %p756_p2 = scmp.ne.s32.totalorder %s964_s21, %s755_s30  ;;  %p757_p3 = pneg %p968_p13 }
  0x18   : > { %s760_s12 = scalar_lea.hbm %s1104_s0, 1024  ;;  %p761_p5 = scmp.lt.u32.totalorder %s964_s21, %s1104_s0 }
  0x19   : > { %p758_p4 = pnand %p757_p3, %p756_p2  ;;  %p762_p8 = scmp.lt.u32.totalorder %s760_s12, %s755_s30 }
  0x1a   : > { %p764_p9 = scmp.lt.u32.totalorder %s755_s30, %s964_s21 }
  0x1b   : > { %p759_p7 = pneg %p758_p4  ;;  %p763_p10 = por %p762_p8, %p761_p5 }
  0x1d   : > { %p765_p0 = por %p764_p9, %p763_p10 }
  0x1f   : > { %p766_p1 = pnand %p765_p0, %p759_p7 }
  0x21   : > { %769 = shalt.err (!%p766_p1)
}
  0x22   : > { %s770_s16 = scalar_lea.vmem %s972_s23, 512  ;;  %s853_s19 = smov [#allocation3]  }
  0x23   : > { %p771_p2 = scmp.ne.s32.totalorder %s972_s23, %s770_s16  ;;  %s775_s20 = sshll.u32 %s853_s19, 4  ;;  %s776_s20 = int_to_ptr.vmem [resolvable:$false] %s775_s20 }
  0x24   : > { %s777_s22 = scalar_lea.vmem %s776_s20, 1024  ;;  %p778_p11 = scmp.lt.s32.totalorder %s972_s23, %s776_s20 }
  0x25   : > { %p773_p4 = pnand %p771_p2, %p757_p3  ;;  %p779_p5 = scmp.lt.s32.totalorder %s777_s22, %s770_s16 }
  0x27   : > { %p774_p12 = pneg %p773_p4  ;;  %p780_p8 = por %p779_p5, %p778_p11 }
  0x29   : > { %p781_p9 = pnand %p780_p8, %p774_p12 }
  0x2b   : > { %784 = shalt.err (!%p781_p9)
}
  0x2c   : > { %692 = dma.hbm_to_vmem [thread:$0]  (!%p968_p13), %s964_s21, 512, %s972_s23, %s239_s25  }
  0x2d   : > { %p1118_p0 = scmp.lt.s32.totalorder %s851_s29, 3  ;;  %p1119_p1 = scmp.ge.s32.totalorder %s851_s29, 1 }
  0x2f   : > { %p256_p3 = pnand %p1119_p1, %p1118_p0 }
  0x30   : > { %s1006_s30 = sand.u32 (!%p256_p3), 1, %s843_s27  }
  0x31   : > { %259 = sbr.rel (%p256_p3) target bundleno = 801 (0x321), region = 48  ;;  %s654_s9 = sshll.u32 (!%p256_p3), %s1006_s30, 5 }
  0x32   : > { %s262_s10 = scalar_lea.sflag (!%p256_p3), [#allocation4], %s1006_s30  ;;  %s265_s24 = scalar_lea.vmem (!%p256_p3), [#allocation3], %s654_s9 }
  0x38   : > { %830 = dma.done.wait (%p944_p6), %s262_s10, 512  }
  0x39   : > { %832 = vsyncadd (%p944_p6), %s262_s10, 4294966784  ;;  %vm300_vm0 = vcmask 261120   ;;  %v1016_v0 = vld [vmem:[%s265_s24] sm:$0xff]  ;;  %v1018_v1 = vld [vmem:[%s265_s24 + $0x8] sm:$0xff]  ;;  %v854_v8 = vmov 0.0   ;;  %vm855_vm1 = vmmov 0   ;;  %v310_v10 = vlaneseq }
  0x3a   : > { %v1020_v2 = vld [vmem:[%s265_s24 + $0x10] sm:$0xff]  ;;  %v1022_v3 = vld [vmem:[%s265_s24 + $0x18] sm:$0xff]  ;;  %v302_v4 = vmax.f32 %v1016_v0, %v1018_v1  ;;  %675 = vmatprep.subr.mxu0 %v854_v8  ;;  %v307_v9 = vld [vmem:[%s1105_s1] sm:$0xff]  ;;  %680 = vmatprep.subr.mxu1 %v854_v8  ;;  %vm316_vm2 = vcmask 64512   ;;  %vm398_vm3 = vcmask 1043456   ;;  %v856_v18 = vmov 0  }
  0x3b   : > { %v301_v5 = vsel %vm300_vm0, %v1022_v3, -inf  ;;  %676 = vmatpush3.msra.mxu0 %v307_v9  ;;  %677 = vmatprep.mubr.msk.f32.mxu0 %vm855_vm1, %v854_v8  ;;  %v311_v11 = vand.u32 127, %v310_v10  ;;  %v313_v12 = vshrl.u32 %v310_v10, 7  ;;  %v392_v16 = vld [vmem:[%s1107_s3] sm:$0xf]  ;;  %vm394_vm5 = vcmask 31744  }
  0x3c   : > { %v303_v6 = vmax.f32 %v1020_v2, %v301_v5  ;;  %682 = vmatprep.mubr.msk.f32.mxu1 %vm855_vm1, %v854_v8  ;;  %681 = vmatpush3.msk.msra.mxu1 %vm398_vm3, %v392_v16  ;;  %v485_v17 = vld [vmem:[%s1109_s5] sm:$0xff]  ;;  %s520_s22 = sld [smem:[#allocation2]]  ;;  %s670_s10 = sshll.u32 %s922_s6, 9 }
  0x3d   : > { %v314_v13 = vsub.s32 %v311_v11, %v313_v12  ;;  %734 = vset.pattern.permute.xlu0 %v856_v18  ;;  %v308_v19 = vld [vmem:[%s1106_s2] sm:$0x1]  ;;  %v480_v32 = vsub.s32 0, %v313_v12  ;;  %s295_s24 = scalar_lea.vmem [#allocation6], %s654_s9  ;;  %s1059_s6 = scalar_lea.hbm %s1111_s7, %s670_s10 }
  0x3e   : > { %v304_v7 = vmax.f32 %v302_v4, %v303_v6  ;;  %v393_v25 = vld [vmem:[%s1108_s4] sm:$0x1]  ;;  %s577_s13 = sshll.u32 %s295_s24, 4  ;;  %s563_s9 = scalar_lea.sflag [#allocation5], %s1006_s30  ;;  %s1061_s13 = int_to_ptr.vmem [resolvable:$true] %s577_s13 }
  0x3f   : > { %s785_s25 = scalar_lea.vmem %s1061_s13, 512  ;;  %p1120_p11 = scmp.ne.s32.totalorder %s1115_s14, 0 }
  0x40   : > { %305 = vmax.xlane.f32.xlu0 %v304_v7  ;;  %p786_p6 = scmp.ne.s32.totalorder %s1061_s13, %s785_s25  ;;  %s857_s12 = smov [#allocation6]  }
  0x41   : > { %s789_s17 = sshll.u32 %s857_s12, 4  ;;  %s790_s17 = int_to_ptr.vmem [resolvable:$false] %s789_s17 }
  0x42   : > { %v521_v62 = vstv %s520_s22  ;;  %p787_p12 = pnand %p786_p6, %p1120_p11  ;;  %s791_s18 = scalar_lea.vmem %s790_s17, 1024 }
  0x43   : > { %p792_p7 = scmp.lt.s32.totalorder %s1061_s13, %s790_s17  ;;  %p793_p10 = scmp.lt.s32.totalorder %s791_s18, %s785_s25 }
  0x44   : > { %p788_p13 = pneg %p787_p12 }
  0x45   : > { %p794_p2 = por %p793_p10, %p792_p7 }
  0x47   : > { %p795_p4 = pnand %p794_p2, %p788_p13 }
  0x56   : > { %488 = vperm.xlu0 %734, %v485_v17  }
  0xcd   : > { %v306_v14 = vpop.xlane.xlu0 %305 }
  0xce   : > { %v315_v15 = vrot.slane %v306_v14, %v314_v13 }
  0xd0   : > { %678 = vmatmul.mubr.msk.f32.vlgmr.msra.gmra.mrb[0].mxu0 %vm316_vm2, %v315_v15 }
  0xd5   : > { %v489_v35 = vpop.permute.xlu0 %488 }
  0xd6   : > { %v491_v36 = vmul.f32 %v489_v35, %v1016_v0  ;;  %v494_v37 = vmul.f32 %v489_v35, %v1022_v3  ;;  %v492_v38 = vmul.f32 %v489_v35, %v1018_v1  ;;  %v493_v39 = vmul.f32 %v489_v35, %v1020_v2 }
  0xd8   : > { %v495_v40 = vrot.slane %v491_v36, 4  ;;  %v513_v41 = vsel %vm300_vm0, %v494_v37, 0.0  ;;  %v501_v42 = vrot.slane %v492_v38, 4  ;;  %v507_v43 = vrot.slane %v493_v39, 4 }
  0xd9   : > { %v514_v44 = vrot.slane %v513_v41, 4 }
  0xda   : > { %v496_v45 = vadd.f32 %v495_v40, %v491_v36  ;;  %v502_v46 = vadd.f32 %v501_v42, %v492_v38  ;;  %v508_v47 = vadd.f32 %v507_v43, %v493_v39 }
  0xdb   : > { %v515_v48 = vadd.f32 %v514_v44, %v513_v41 }
  0xdc   : > { %v497_v49 = vrot.slane %v496_v45, 2  ;;  %v503_v50 = vrot.slane %v502_v46, 2  ;;  %v509_v51 = vrot.slane %v508_v47, 2 }
  0xdd   : > { %v516_v52 = vrot.slane %v515_v48, 2 }
  0xde   : > { %v498_v53 = vadd.f32 %v497_v49, %v496_v45  ;;  %v504_v54 = vadd.f32 %v503_v50, %v502_v46  ;;  %v510_v55 = vadd.f32 %v509_v51, %v508_v47 }
  0xdf   : > { %v517_v56 = vadd.f32 %v516_v52, %v515_v48 }
  0xe0   : > { %v499_v57 = vrot.slane %v498_v53, 1  ;;  %v505_v58 = vrot.slane %v504_v54, 1  ;;  %v511_v59 = vrot.slane %v510_v55, 1 }
  0xe1   : > { %v518_v60 = vrot.slane %v517_v56, 1 }
  0xe2   : > { %v500_v61 = vadd.f32 %v499_v57, %v498_v53  ;;  %v506_v63 = vadd.f32 %v505_v58, %v504_v54  ;;  %v512_v4 = vadd.f32 %v511_v59, %v510_v55 }
  0xe3   : > { %v519_v5 = vadd.f32 %v518_v60, %v517_v56 }
  0xe4   : > { %v522_v6 = vadd.f32 %v521_v62, %v500_v61  ;;  %v523_v7 = vadd.f32 %v521_v62, %v506_v63  ;;  %v524_v8 = vadd.f32 %v521_v62, %v512_v4 }
  0xe5   : > { %v525_v9 = vadd.f32 %v521_v62, %v519_v5 }
  0xe6   : > { %v660_v10 = vmul.f32 -1.442695, %v522_v6  ;;  %v661_v11 = vmul.f32 -1.442695, %v523_v7  ;;  %v662_v12 = vmul.f32 -1.442695, %v524_v8 }
  0xe7   : > { %v663_v13 = vmul.f32 -1.442695, %v525_v9 }
 0x1a3   : > { %v385_v20 = vpop.f32.mrb[0].mxu0 }
 0x1a4   : > { %v386_v21 = vadd.f32 %v385_v20, %v308_v19  ;;  %v679_v22 = vpop.f32.mrb[1].mxu0 }
 0x1a6   : > { %vm389_vm4 = vcmp.gt.f32.partialorder %v386_v21, 0.0  ;;  %v390_v23 = vmul.f32 0.2, %v386_v21 }
 0x1a8   : > { %v391_v24 = vsel %vm389_vm4, %v386_v21, %v390_v23 }
 0x1a9   : > { %683 = vmatmul.mubr.msk.f32.vlgmr.msra.gmra.mrb[0].mxu1 %vm394_vm5, %v391_v24 }
 0x27c   : > { %v468_v26 = vpop.f32.mrb[0].mxu1 }
 0x27d   : > { %v469_v27 = vadd.f32 %v468_v26, %v393_v25  ;;  %v684_v28 = vpop.f32.mrb[1].mxu1 }
 0x27f   : > { %v659_v29 = vmul.f32 -1.442695, %v469_v27 }
 0x281   : > { %735 = vpow2.f32 %v659_v29 }
 0x28b   : > { %v736_v30 = vpop.eup %735 }
 0x28c   : > { %v475_v31 = vadd.f32 1.0, %v736_v30 }
 0x28e   : > { %737 = vrcp.f32 %v475_v31 }
 0x28f   : > { %739 = vpow2.f32 %v660_v10 }
 0x290   : > { %741 = vpow2.f32 %v661_v11 }
 0x291   : > { %743 = vpow2.f32 %v662_v12 }
 0x292   : > { %745 = vpow2.f32 %v663_v13 }
 0x298   : > { %v738_v33 = vpop.eup %737 }
 0x299   : > { %v481_v34 = vrot.slane %v738_v33, %v480_v32  ;;  %v740_v14 = vpop.eup %739 }
 0x29a   : > { %v742_v15 = vpop.eup %741  ;;  %v538_v18 = vadd.f32 1.0, %v740_v14 }
 0x29b   : > { %483 = vbcast.lane.b32.xlu1 %v481_v34, 256  ;;  %v744_v16 = vpop.eup %743  ;;  %v539_v19 = vadd.f32 1.0, %v742_v15 }
 0x29c   : > { %v746_v17 = vpop.eup %745  ;;  %v540_v20 = vadd.f32 1.0, %v744_v16  ;;  %747 = vrcp.f32 %v538_v18 }
 0x29d   : > { %v541_v21 = vadd.f32 1.0, %v746_v17  ;;  %749 = vrcp.f32 %v539_v19 }
 0x29e   : > { %751 = vrcp.f32 %v540_v20 }
 0x29f   : > { %753 = vrcp.f32 %v541_v21 }
 0x2a6   : > { %v748_v22 = vpop.eup %747 }
 0x2a7   : > { %v750_v23 = vpop.eup %749 }
 0x2a8   : > { %v752_v24 = vpop.eup %751 }
 0x2a9   : > { %v754_v25 = vpop.eup %753 }
 0x30d   : > { %v484_v26 = vpop.permute.xlu1 %483 }
 0x30e   : > { %v550_v27 = vadd.f32 %v748_v22, %v484_v26  ;;  %v551_v28 = vadd.f32 %v750_v23, %v484_v26  ;;  %v552_v29 = vadd.f32 %v752_v24, %v484_v26  ;;  %v553_v30 = vadd.f32 %v754_v25, %v484_v26 }
 0x310   : > { %v554_v31 = vmul.f32 %v550_v27, %v1016_v0  ;;  %v555_v32 = vmul.f32 %v551_v28, %v1018_v1  ;;  %v556_v33 = vmul.f32 %v552_v29, %v1020_v2  ;;  %v557_v34 = vmul.f32 %v553_v30, %v1022_v3 }
 0x312   : > { %558 = vst [vmem:[%s295_s24] sm:$0xff] %v554_v31  ;;  %559 = vst [vmem:[%s295_s24 + $0x8] sm:$0xff] %v555_v32 }
 0x313   : > { %560 = vst [vmem:[%s295_s24 + $0x10] sm:$0xff] %v556_v33  ;;  %561 = vst.msk [vmem:[%s295_s24 + $0x18] sm:$0xff] %vm300_vm0, %v557_v34 }
 0x314   : > { %798 = shalt.err (!%p795_p4)
}
 0x315   : > { %s799_s30 = scalar_lea.hbm %s1059_s6, 512  ;;  %s803_s20 = scalar_lea.hbm %s1111_s7, 1024 }
 0x316   : > { %p800_p5 = scmp.ne.s32.totalorder %s1059_s6, %s799_s30  ;;  %p804_p0 = scmp.lt.u32.totalorder %s1059_s6, %s1111_s7 }
 0x317   : > { %p805_p1 = scmp.lt.u32.totalorder %s803_s20, %s799_s30  ;;  %p807_p6 = scmp.lt.u32.totalorder %s799_s30, %s1059_s6 }
 0x318   : > { %p801_p8 = pnand %p800_p5, %p1120_p11 }
 0x319   : > { %p806_p3 = por %p805_p1, %p804_p0 }
 0x31a   : > { %p802_p9 = pneg %p801_p8 }
 0x31b   : > { %p808_p12 = por %p807_p6, %p806_p3 }
 0x31d   : > { %p809_p13 = pnand %p808_p12, %p802_p9 }
 0x31f   : > { %812 = shalt.err (!%p809_p13)
}
 0x320   : > { %687 = dma.vmem_to_hbm [thread:$0]  (%p1120_p11), %s1061_s13, 512, %s1059_s6, %s563_s9  }
 0x321 PF: > { %s589_s24 = sand.u32 1, %s839_s26   ;;  %p1121_p7 = scmp.ne.s32.totalorder %s1116_s15, 0 }
 0x322   : > { %p1122_p10 = scmp.ge.s32.totalorder %s851_s29, 2  ;;  %s590_s21 = scalar_lea.sflag [#allocation5], %s589_s24 }
 0x324   : > { %p694_p2 = pnand %p1122_p10, %p1121_p7 }
 0x326   : > { %834 = dma.done.wait (!%p694_p2), %s590_s21, 512  }
 0x327   : > { %836 = vsyncadd (!%p694_p2), %s590_s21, 4294966784  ;;  %p21_p4 = scmp.ge.s32.totalorder %s926_s8, 4   ;;  %s1123_s26 = smov %s843_s27 }
 0x328   : > { %s1124_s27 = smov %s847_s28  ;;  %s1125_s28 = smov %s938_s11 }
 0x329   : > { %s1126_s29 = smov %s926_s8  ;;  %23 = sbr.rel (!%p21_p4) target bundleno = 7 (0x7), region = 93 }
 0x330   :  { %595 = vsyncpa [#allocation4], 1 }
 0x331   :  { %597 = vsyncpa [#allocation4 + $0x1], 1 }
 0x332   :  { %598 = vsyncpa [#allocation5], 1 }
 0x333   :  { %600 = vsyncpa [#allocation5 + $0x1], 1 }

</bundles_post_ra>
